<compile_context>
chip_gen: v5e
topology: v5e:2x2
jax: 0.10.0
libtpu: 0.0.40
codegen_flags: <defaults>
</compile_context>

<pallas_src>
import jax
import jax.numpy as jnp
from jax.experimental import pallas as pl
from jax.experimental.pallas import tpu as pltpu


def _pos_enc_kernel(x_ref, emb_ref, o_ref):
    # x_ref / o_ref: (t_r, t_c) row-block of the flattened [B, S*D] array.
    # emb_ref:       (1,   t_c) positional-embedding slab, broadcast over rows.
    o_ref[...] = x_ref[...] + emb_ref[...]


# ---------------------------------------------------------------------------
# Tile selection
# ---------------------------------------------------------------------------
_ROW_TILE_TARGET = 256                  # rows per block (multiple of sublane pack)
_TILE_BYTES_BUDGET = 8 * 1024 * 1024    # per-buffer DMA block target (bytes)
_VMEM_LIMIT_BYTES = 48 * 1024 * 1024    # 4 x 8 MiB tiles + emb slabs < 48 MiB (v7x-safe)
_MIN_SPLIT_BYTES = 1 * 1024 * 1024      # below this, a 1-step grid is fine
_PALLAS_MIN_ELEMS = 1 << 20             # dispatcher threshold (standalone add)


def _round_up(v: int, m: int) -> int:
    return ((v + m - 1) // m) * m


def _sublane_align(itemsize: int) -> int:
    # Packing factor along sublanes: f32 -> 8, bf16/f16 -> 16, int8/fp8 -> 32.
    return 8 * max(1, 4 // max(itemsize, 1))


def _choose_tiles(B: int, SD: int, itemsize: int):
    sub = _sublane_align(itemsize)

    # Row (sublane) tile: full extent for tiny batches (legal BlockSpec),
    # otherwise a multiple of the packing factor; cdiv grid covers the ragged
    # remainder with a partial edge block.
    if B <= sub:
        t_r = B
    else:
        t_r = min(_ROW_TILE_TARGET, _round_up(B, sub))
        t_r -= t_r % sub

    # Column (lane) tile from a per-buffer byte budget; a multiple of 128 (or
    # full extent when SD < 128) so stores stay unmasked vst.
    if SD <= 128:
        t_c = SD
    else:
        budget_elems = max(128, _TILE_BYTES_BUDGET // max(itemsize, 1))
        t_c = max(128, (budget_elems // max(t_r, 1)) // 128 * 128)
        t_c = min(t_c, _round_up(SD, 128))

    # v7x has 2 TensorCores: ensure the parallel grid has >= 2 steps when the
    # workload is big enough to be worth sharding (no-op on v5e/v6e: 1 TC).
    n_col = pl.cdiv(SD, t_c)
    n_row = pl.cdiv(B, t_r)
    if (n_col * n_row < 2 and SD >= 256
            and B * SD * itemsize >= _MIN_SPLIT_BYTES):
        t_c = max(128, _round_up(pl.cdiv(SD, 2), 128))

    return t_r, t_c


# ---------------------------------------------------------------------------
# Pallas wrapper
# ---------------------------------------------------------------------------
def positional_encoding_batched(x, emb_table, *, donate_x=False,
                                row_tile=None, col_tile=None):
    """x: [B, S, D]; emb_table: [num_positions, D]. Returns x + emb[:S]."""
    B, S, D = x.shape
    num_positions = emb_table.shape[0]
    if S > num_positions:
        raise ValueError(f"seq_len {S} exceeds num_positions {num_positions}")

    dtype = x.dtype
    SD = S * D

    # Lane-dense layout: (S, D) -> S*D so the lane dim is typically a multiple
    # of 128 and stores are unmasked. The flatten preserves the positional
    # broadcast exactly since emb does not depend on the batch index.
    # Note: emb is cast to x.dtype before the add (bf16 inputs add in bf16).
    x2d = x.reshape(B, SD)
    emb2d = emb_table[:S].astype(dtype).reshape(1, SD)

    t_r, t_c = _choose_tiles(B, SD, jnp.dtype(dtype).itemsize)
    if row_tile is not None:
        t_r = row_tile
    if col_tile is not None:
        t_c = col_tile

    # Lane-blocks outer, row-blocks inner: emb's block index is constant over
    # the inner axis, so Pallas reuses the resident emb slab instead of
    # re-DMAing it for every row block.
    grid = (pl.cdiv(SD, t_c), pl.cdiv(B, t_r))

    extra = {}
    if donate_x:
        extra["input_output_aliases"] = {0: 0}

    out2d = pl.pallas_call(
        _pos_enc_kernel,
        out_shape=jax.ShapeDtypeStruct((B, SD), dtype),
        grid_spec=pltpu.PrefetchScalarGridSpec(
            num_scalar_prefetch=0,
            grid=grid,
            in_specs=[
                pl.BlockSpec((t_r, t_c), lambda j, i: (i, j)),   # x
                pl.BlockSpec((1, t_c), lambda j, i: (0, j)),     # emb (row-bcast)
            ],
            out_specs=pl.BlockSpec((t_r, t_c), lambda j, i: (i, j)),
        ),
        compiler_params=pltpu.CompilerParams(
            dimension_semantics=("parallel", "parallel"),
            vmem_limit_bytes=_VMEM_LIMIT_BYTES,
        ),
        **extra,
    )(x2d, emb2d)

    return out2d.reshape(B, S, D)


def positional_encoding(x, emb_table, batched=True, force_pallas=False,
                        **kwargs):
    """Mirrors PositionalEncoding.forward.

    batched=True : x is [B, S, D];  batched=False: x is [S, D].
    A standalone bandwidth-bound add cannot beat XLA's roofline, so small and
    medium workloads route to a plain XLA add unless `force_pallas` is set.
    """
    x3 = x if batched else x[None, :, :]
    if (not force_pallas) and x3.size < _PALLAS_MIN_ELEMS:
        S = x3.shape[1]
        out = x3 + emb_table[:S].astype(x3.dtype)[None, :, :]
    else:
        out = positional_encoding_batched(x3, emb_table, **kwargs)
    return out if batched else out[0]


if __name__ == "__main__":
    key = jax.random.PRNGKey(0)
    k_x, k_emb, k_x2, k_emb2, k_x3 = jax.random.split(key, 5)

    # Small shapes consistent with the module: d_model=32, num_positions=20,
    # batch=2, seq_len=8.
    B, S, D = 2, 8, 32
    NUM_POSITIONS = 20

    emb_table = jax.random.normal(k_emb, (NUM_POSITIONS, D), dtype=jnp.float32)
    x = jax.random.normal(k_x, (B, S, D), dtype=jnp.float32)

    # Force the Pallas path so the kernel is exercised at demo size (the
    # dispatcher would otherwise route this tiny add to XLA).
    out = jax.block_until_ready(
        positional_encoding(x, emb_table, batched=True, force_pallas=True))
    ref = x + emb_table[:S][None, :, :]
    assert out.shape == x.shape
    assert jnp.allclose(out, ref, atol=1e-6), "mismatch vs reference"

    # Non-batched path ([S, D] input) through the same kernel.
    out_nb = jax.block_until_ready(
        positional_encoding(x[0], emb_table, batched=False, force_pallas=True))
    assert jnp.allclose(out_nb, x[0] + emb_table[:S], atol=1e-6)

    # Ragged shapes (B not a multiple of 8, S*D not a multiple of 128) exercise
    # the cdiv-grid partial-edge-block path.
    B2, S2, D2 = 10, 20, 48
    emb_table2 = jax.random.normal(k_emb2, (NUM_POSITIONS, D2), dtype=jnp.float32)
    x2 = jax.random.normal(k_x2, (B2, S2, D2), dtype=jnp.float32)
    out2 = jax.block_until_ready(
        positional_encoding(x2, emb_table2, batched=True, force_pallas=True))
    assert jnp.allclose(out2, x2 + emb_table2[:S2][None, :, :], atol=1e-6)

    # Multi-step grid (forced small tiles) exercises the swapped index maps and
    # the resident-emb reuse across the inner row axis.
    B3 = 16
    x3 = jax.random.normal(k_x3, (B3, S, D), dtype=jnp.float32)
    out3 = jax.block_until_ready(
        positional_encoding(x3, emb_table, batched=True, force_pallas=True,
                            row_tile=8, col_tile=128))
    assert jnp.allclose(out3, x3 + emb_table[:S][None, :, :], atol=1e-6)

    # Tiny-shape dispatch (XLA fast path) still matches.
    out_small = positional_encoding(x, emb_table, batched=True)
    assert jnp.allclose(out_small, ref, atol=1e-6)

    print("KERNEL_OK")
</pallas_src>

<mosaic_0001>
module attributes {stable_mosaic.version = 11 : i64} {
  func.func @_pos_enc_kernel(%arg0: i32, %arg1: i32, %arg2: memref<2x256xf32, #tpu.memory_space<vmem>>, %arg3: memref<1x256xf32, #tpu.memory_space<vmem>>, %arg4: memref<2x256xf32, #tpu.memory_space<vmem>>) attributes {dimension_semantics = [#tpu.dimension_semantics<parallel>, #tpu.dimension_semantics<parallel>], iteration_bounds = array<i64: 1, 1>, scalar_prefetch = 0 : i64, scratch_operands = 0 : i64, tpu.core_type = #tpu.core_type<tc>, window_params = [{transform_indices = @transform_0, window_bounds = array<i64: 2, 256>}, {transform_indices = @transform_1, window_bounds = array<i64: 1, 256>}, {transform_indices = @transform_2, window_bounds = array<i64: 2, 256>}]} {
    %c0 = arith.constant 0 : index
    %c0_0 = arith.constant 0 : index
    %0 = vector.load %arg2[%c0, %c0_0] : memref<2x256xf32, #tpu.memory_space<vmem>>, vector<2x256xf32>
    %c0_1 = arith.constant 0 : index
    %c0_2 = arith.constant 0 : index
    %1 = vector.load %arg3[%c0_1, %c0_2] : memref<1x256xf32, #tpu.memory_space<vmem>>, vector<1x256xf32>
    %2 = vector.broadcast %1 : vector<1x256xf32> to vector<2x256xf32>
    %3 = arith.addf %0, %2 : vector<2x256xf32>
    %c0_3 = arith.constant 0 : index
    %c0_4 = arith.constant 0 : index
    %4 = vector.load %arg4[%c0_3, %c0_4] : memref<2x256xf32, #tpu.memory_space<vmem>>, vector<2x256xf32>
    tpu.vector_store %arg4[%c0_3, %c0_4], %3 {strides = array<i32>} : memref<2x256xf32, #tpu.memory_space<vmem>>, vector<2x256xf32>,
    return
  }
  func.func @transform_0(%arg0: i32, %arg1: i32) -> (i32, i32) {
    %c0_i32 = arith.constant 0 : i32
    return %arg1, %arg0 : i32, i32
  }
  func.func @transform_1(%arg0: i32, %arg1: i32) -> (i32, i32) {
    %c0_i32 = arith.constant 0 : i32
    %c0_i32_0 = arith.constant 0 : i32
    return %c0_i32, %arg0 : i32, i32
  }
  func.func @transform_2(%arg0: i32, %arg1: i32) -> (i32, i32) {
    %c0_i32 = arith.constant 0 : i32
    return %arg1, %arg0 : i32, i32
  }
}

</mosaic_0001>

<bundles_post_ra>
// kernel: tpu_custom_call.1
= control target key start
LH: loop header
LB: loop body
LE: loop exit
PB: predicated region body
PF: predicated region fallthrough
CT: control target
= control target key end

     0   :  { %7 = vsyncpa [#allocation3], 0  ;;  %s177_s0 = inlined_call_operand.hbm [shape: f32[2,256], index: 0, kind: input, shape index: {}]   ;;  %s178_s1 = inlined_call_operand.hbm [shape: f32[1,256], index: 1, kind: input, shape index: {}]   ;;  %s179_s2 = inlined_call_operand.hbm [shape: f32[2,256], index: 2, kind: output, shape index: {}]  }
   0x1   :  { %8 = vsyncpa [#allocation6], 0 }
   0x2   :  { %9 = vsyncpa [#allocation4], 0  ;;  %s15_s11 = sshll.u32 %s177_s0, 4  ;;  %s150_s12 = smov [#allocation2]   ;;  %s16_s11 = int_to_ptr.hbm [resolvable:$true] %s15_s11 }
   0x3   :  { %s17_s13 = sshll.u32 %s150_s12, 4  ;;  %s26_s16 = sshll.u32 %s178_s1, 4  ;;  %s18_s13 = int_to_ptr.vmem [resolvable:$true] %s17_s13  ;;  %s27_s16 = int_to_ptr.hbm [resolvable:$true] %s26_s16 }
   0x4   :  { %20 = dma.hbm_to_vmem [thread:$0]  %s16_s11, 64, %s18_s13, [#allocation3]  }
   0x5   :  { %s151_s17 = smov [#allocation5]  }
   0x6   :  { %s28_s18 = sshll.u32 %s151_s17, 4  ;;  %s29_s18 = int_to_ptr.vmem [resolvable:$true] %s28_s18 }
   0x7   :  { %31 = dma.hbm_to_vmem [thread:$0]  %s27_s16, 32, %s29_s18, [#allocation6]  }
   0x8   :  { %144 = dma.done.wait [#allocation3], 64  }
   0x9   :  { %145 = vsyncadd [#allocation3], 4294967232 }
   0xa   :  { %146 = dma.done.wait [#allocation6], 32  }
   0xb   :  { %147 = vsyncadd [#allocation6], 4294967264  ;;  %v41_v0 = vld [vmem:[#allocation5] sm:$0x3]  ;;  %vm46_vm0 = vcmask 1041408   ;;  %s152_s0 = smov [#allocation7]  }
   0xc   :  { %v43_v1 = vperm.slane %v41_v0, 0  ;;  %v44_v2 = vperm.slane %v41_v0, 1  ;;  %v40_v3 = vld [vmem:[#allocation2] sm:$0xf]  ;;  %s56_s19 = sshll.u32 %s152_s0, 4  ;;  %s58_s21 = sshll.u32 %s179_s2, 4  ;;  %s57_s19 = int_to_ptr.vmem [resolvable:$true] %s56_s19  ;;  %s59_s21 = int_to_ptr.hbm [resolvable:$true] %s58_s21 }
   0xe   :  { %v45_v4 = vrot.slane %v44_v2, 6 }
  0x10   :  { %v47_v5 = vsel %vm46_vm0, %v43_v1, %v45_v4 }
  0x11   :  { %v49_v6 = vadd.f32 %v47_v5, %v40_v3 }
  0x13   :  { %50 = vst [vmem:[#allocation7] sm:$0xf] %v49_v6 }
  0x14   :  { %61 = dma.vmem_to_hbm [thread:$0]  %s57_s19, 64, %s59_s21, [#allocation4]  }
  0x15   :  { %148 = dma.done.wait [#allocation4], 64  }
  0x16   :  { %149 = vsyncadd [#allocation4], 4294967232 }
  0x17   :  { %66 = vsyncpa [#allocation3], 1 }
  0x18   :  { %67 = vsyncpa [#allocation6], 1 }
  0x19   :  { %68 = vsyncpa [#allocation4], 1 }

</bundles_post_ra>
